<compile_context>
chip_gen: v7x
topology: tpu7x:2x2x1
jax: 0.10.0
libtpu: 0.0.40
codegen_flags: <defaults>
</compile_context>

<pallas_src>
import jax
import jax.numpy as jnp
from jax.experimental import pallas as pl
from jax.experimental.pallas import tpu as pltpu


def _round_up(x, m):
    return ((x + m - 1) // m) * m


def _largest_divisor_tile(F, target):
    """Largest multiple of 128 that divides F and is <= target (>= 128)."""
    best = 128
    d = 256
    top = min(F, target)
    while d <= top:
        if F % d == 0:
            best = d
        d += 128
    return best


def _vmem_capacity_bytes():
    try:
        return int(pltpu.get_tpu_info().vmem_capacity_bytes)
    except Exception:
        return 64 * 2**20  # conservative (v7x-sized) fallback


def _pick_tiles(B, F, tm, tn, tk, out_bytes, tile_budget):
    # bf16 packs 16 rows per vreg sublane group -> round the batch tile to 16.
    tm = _round_up(min(tm, _round_up(B, 16)), 16)
    if F % 128 == 0:
        tn = _largest_divisor_tile(F, tn)
        tk = _largest_divisor_tile(F, tk)
    else:
        tn = tk = F  # small / odd F: full-extent blocks

    def vmem_est(tm_, tn_, tk_):
        return (2 * tm_ * tk_ * 2            # x      bf16, double-buffered
                + 2 * tk_ * tn_ * 2          # W      bf16, double-buffered
                + 2 * tn_ * 4                # bias   f32
                + 2 * tm_ * tn_ * 2          # skip   bf16 (residual)
                + 2 * tm_ * tn_ * out_bytes  # output stream
                + tm_ * tn_ * 4)             # f32 accumulator scratch

    # Shrink until the tiles fit the budget.  tk first (only adds k-steps, no
    # extra HBM traffic), then tn (adds x re-reads), then tm (adds W re-reads).
    while vmem_est(tm, tn, tk) > tile_budget:
        if F % 128 == 0 and tk > 128 and tk >= tn:
            tk = _largest_divisor_tile(F, tk - 128)
        elif F % 128 == 0 and tn > 128:
            tn = _largest_divisor_tile(F, tn - 128)
        elif tm > 16:
            tm = max(tm - 16, 16)
        else:
            break
    return tm, tn, tk


def mlp_kernel(x_ref, w_ref, b_ref, skip_ref, o_ref, acc_ref):
    # x:(tm,tk) bf16, w:(tk,tn) bf16, b:(1,tn) f32, skip:(tm,tn) bf16
    k = pl.program_id(2)

    @pl.when(k == 0)
    def _init():
        acc_ref[...] = jnp.zeros_like(acc_ref)

    # MXU matmul: bf16 operands, f32 accumulation.
    acc_ref[...] += jnp.dot(x_ref[...], w_ref[...],
                            preferred_element_type=jnp.float32)

    @pl.when(k == pl.num_programs(2) - 1)
    def _finalize():
        # TODO(synk): dropout is identity in eval mode; training-mode dropout
        # would use pltpu.prng_seed + pltpu.prng_random_bits here.
        y = acc_ref[...] + b_ref[...] + skip_ref[...].astype(jnp.float32)
        o_ref[...] = jnp.maximum(y, 0.0).astype(o_ref.dtype)


def mlp_forward(x, w, b, *, tm=512, tn=512, tk=2048):
    """relu(x @ w + b + x).  Pass w pre-converted to bf16 to skip the cast."""
    B, F_in = x.shape
    F_k, F_out = w.shape
    assert F_in == F_k and b.shape == (F_out,)
    assert F_in == F_out, "residual add requires in_feature == out_feature"
    F = F_in

    out_dtype = jnp.float32 if x.dtype == jnp.bfloat16 else x.dtype
    out_dtype = x.dtype
    out_bytes = jnp.dtype(out_dtype).itemsize

    # Generation-aware VMEM budgeting: scoped limit ~85% of physical VMEM
    # (headroom for compiler scratch / DMA descriptors), tiles target ~70% of
    # that.  v5e/v6e: ~108 MiB scoped; v7x: ~54 MiB scoped.
    vmem_cap = _vmem_capacity_bytes()
    vmem_limit = int(vmem_cap * 0.85)
    tile_budget = int(vmem_limit * 0.70)

    tm, tn, tk = _pick_tiles(B, F, tm, tn, tk, out_bytes, tile_budget)

    grid_m = pl.cdiv(B, tm)
    grid_n = F // tn
    grid_k = F // tk

    # v7x has two TensorCores: make sure the parallel axes have >= 2 steps when
    # the problem allows it (harmless on single-TC chips).
    if grid_m * grid_n == 1:
        if B >= 32:
            tm = _round_up((B + 1) // 2, 16)
            grid_m = pl.cdiv(B, tm)
        elif F % 256 == 0 and tn == F:
            tn = F // 2
            grid_n = 2

    Bp = grid_m * tm

    # bf16 operands feed the MXU at full rate and halve x/W DMA traffic.
    # Single fused cast(+pad) pass under jit; the same bf16 buffer is reused
    # as the residual stream (halves the skip traffic vs streaming f32 x).
    x_mm = x if x.dtype == jnp.bfloat16 else x.astype(jnp.bfloat16)
    if Bp != B:
        x_mm = jnp.pad(x_mm, ((0, Bp - B), (0, 0)))
    w_mm = w if w.dtype == jnp.bfloat16 else w.astype(jnp.bfloat16)
    b2 = b.reshape(1, F).astype(jnp.float32)

    out_p = pl.pallas_call(
        mlp_kernel,
        out_shape=jax.ShapeDtypeStruct((Bp, F), out_dtype),
        grid_spec=pltpu.PrefetchScalarGridSpec(
            num_scalar_prefetch=0,
            grid=(grid_m, grid_n, grid_k),
            in_specs=[
                pl.BlockSpec((tm, tk), lambda i, j, k: (i, k)),   # x (bf16)
                pl.BlockSpec((tk, tn), lambda i, j, k: (k, j)),   # W (bf16)
                pl.BlockSpec((1, tn), lambda i, j, k: (0, j)),    # bias (f32)
                pl.BlockSpec((tm, tn), lambda i, j, k: (i, j)),   # residual
            ],
            out_specs=pl.BlockSpec((tm, tn), lambda i, j, k: (i, j)),
            scratch_shapes=[pltpu.VMEM((tm, tn), jnp.float32)],
        ),
        compiler_params=pltpu.CompilerParams(
            dimension_semantics=("parallel", "parallel", "arbitrary"),
            vmem_limit_bytes=vmem_limit,
        ),
    )(x_mm, w_mm, b2, x_mm)   # x_mm passed twice: matmul operand + residual

    return out_p[:B] if Bp != B else out_p


if __name__ == "__main__":
    # Residual connection (x + skip_x) requires in_feature == out_feature.
    in_feature = out_feature = 128
    batch = 12          # deliberately not 8/16-aligned: exercises padding
    dropout_p = 0.1     # unused at inference time

    key = jax.random.PRNGKey(0)
    kx, kw, kb = jax.random.split(key, 3)

    x = jax.random.normal(kx, (batch, in_feature), dtype=jnp.float32)

    # Deterministic PyTorch-style init: U(-1/sqrt(in), 1/sqrt(in))
    bound = 1.0 / (in_feature ** 0.5)
    w = jax.random.uniform(kw, (in_feature, out_feature), jnp.float32,
                           minval=-bound, maxval=bound)
    b = jax.random.uniform(kb, (out_feature,), jnp.float32,
                           minval=-bound, maxval=bound)

    # Pre-convert the weight to bf16 once (parameter-load time), so the kernel
    # call does not pay a per-call full-HBM cast of W.
    w_bf = w.astype(jnp.bfloat16)

    fwd = jax.jit(mlp_forward)
    out = fwd(x, w_bf, b)
    jax.block_until_ready(out)

    # Reference with the same operand dtypes (bf16 x/W/residual, f32 accum).
    x_bf32 = x.astype(jnp.bfloat16).astype(jnp.float32)
    ref_bf16 = jnp.maximum(
        jnp.dot(x.astype(jnp.bfloat16), w_bf,
                preferred_element_type=jnp.float32) + b + x_bf32, 0.0)
    # Full-precision sanity reference (bf16 operands => loose tolerance).
    ref_f32 = jnp.maximum(x @ w + b + x, 0.0)

    assert out.shape == (batch, out_feature)
    assert jnp.allclose(out, ref_bf16, atol=1e-3, rtol=1e-3)
    assert jnp.allclose(out, ref_f32, atol=6e-2, rtol=5e-2)

    print("KERNEL_OK")
</pallas_src>

<mosaic_0001>
module attributes {stable_mosaic.version = 11 : i64} {
  func.func @mlp_kernel(%arg0: i32, %arg1: i32, %arg2: i32, %arg3: memref<16x128xbf16, #tpu.memory_space<vmem>>, %arg4: memref<128x128xbf16, #tpu.memory_space<vmem>>, %arg5: memref<1x128xf32, #tpu.memory_space<vmem>>, %arg6: memref<16x128xbf16, #tpu.memory_space<vmem>>, %arg7: memref<16x128xf32, #tpu.memory_space<vmem>>, %arg8: memref<16x128xf32, #tpu.memory_space<vmem>>) attributes {dimension_semantics = [#tpu.dimension_semantics<parallel>, #tpu.dimension_semantics<parallel>, #tpu.dimension_semantics<arbitrary>], iteration_bounds = array<i64: 1, 1, 1>, scalar_prefetch = 0 : i64, scratch_operands = 1 : i64, tpu.core_type = #tpu.core_type<tc>, window_params = [{transform_indices = @transform_0, window_bounds = array<i64: 16, 128>}, {transform_indices = @transform_1, window_bounds = array<i64: 128, 128>}, {transform_indices = @transform_2, window_bounds = array<i64: 1, 128>}, {transform_indices = @transform_3, window_bounds = array<i64: 16, 128>}, {transform_indices = @transform_4, window_bounds = array<i64: 16, 128>}]} {
    %c0_i32 = arith.constant 0 : i32
    %0 = arith.cmpi eq, %arg2, %c0_i32 : i32
    %1 = arith.extui %0 : i1 to i32
    %c0_i32_0 = arith.constant 0 : i32
    %2 = arith.cmpi ne, %1, %c0_i32_0 : i32
    scf.if %2 {
      %cst_10 = arith.constant 0.000000e+00 : f32
      %12 = vector.broadcast %cst_10 : f32 to vector<16x128xf32>
      %c0_11 = arith.constant 0 : index
      %c0_12 = arith.constant 0 : index
      %13 = vector.load %arg8[%c0_11, %c0_12] : memref<16x128xf32, #tpu.memory_space<vmem>>, vector<16x128xf32>
      tpu.vector_store %arg8[%c0_11, %c0_12], %12 {strides = array<i32>} : memref<16x128xf32, #tpu.memory_space<vmem>>, vector<16x128xf32>,
    } else {
    }
    %c0 = arith.constant 0 : index
    %c0_1 = arith.constant 0 : index
    %3 = vector.load %arg8[%c0, %c0_1] : memref<16x128xf32, #tpu.memory_space<vmem>>, vector<16x128xf32>
    %c0_2 = arith.constant 0 : index
    %c0_3 = arith.constant 0 : index
    %4 = vector.load %arg3[%c0_2, %c0_3] : memref<16x128xbf16, #tpu.memory_space<vmem>>, vector<16x128xbf16>
    %c0_4 = arith.constant 0 : index
    %c0_5 = arith.constant 0 : index
    %5 = vector.load %arg4[%c0_4, %c0_5] : memref<128x128xbf16, #tpu.memory_space<vmem>>, vector<128x128xbf16>
    %cst = arith.constant dense<0.000000e+00> : vector<16x128xf32>
    %6 = tpu.matmul %4, %5, %cst {dimension_numbers = #tpu.dot_dimension_numbers<[1], [0], [0], [1], [0, 0, 1, 1], [], []>} : vector<16x128xbf16>, vector<128x128xbf16>, vector<16x128xf32> -> vector<16x128xf32>
    %7 = arith.addf %3, %6 : vector<16x128xf32>
    %c0_6 = arith.constant 0 : index
    %c0_7 = arith.constant 0 : index
    %8 = vector.load %arg8[%c0_6, %c0_7] : memref<16x128xf32, #tpu.memory_space<vmem>>, vector<16x128xf32>
    tpu.vector_store %arg8[%c0_6, %c0_7], %7 {strides = array<i32>} : memref<16x128xf32, #tpu.memory_space<vmem>>, vector<16x128xf32>,
    %c0_i32_8 = arith.constant 0 : i32
    %9 = arith.cmpi eq, %arg2, %c0_i32_8 : i32
    %10 = arith.extui %9 : i1 to i32
    %c0_i32_9 = arith.constant 0 : i32
    %11 = arith.cmpi ne, %10, %c0_i32_9 : i32
    scf.if %11 {
      %c0_10 = arith.constant 0 : index
      %c0_11 = arith.constant 0 : index
      %12 = vector.load %arg8[%c0_10, %c0_11] : memref<16x128xf32, #tpu.memory_space<vmem>>, vector<16x128xf32>
      %c0_12 = arith.constant 0 : index
      %c0_13 = arith.constant 0 : index
      %13 = vector.load %arg5[%c0_12, %c0_13] : memref<1x128xf32, #tpu.memory_space<vmem>>, vector<1x128xf32>
      %14 = vector.broadcast %13 : vector<1x128xf32> to vector<16x128xf32>
      %15 = arith.addf %12, %14 : vector<16x128xf32>
      %c0_14 = arith.constant 0 : index
      %c0_15 = arith.constant 0 : index
      %16 = vector.load %arg6[%c0_14, %c0_15] : memref<16x128xbf16, #tpu.memory_space<vmem>>, vector<16x128xbf16>
      %17 = arith.extf %16 : vector<16x128xbf16> to vector<16x128xf32>
      %18 = arith.addf %15, %17 : vector<16x128xf32>
      %cst_16 = arith.constant 0.000000e+00 : f32
      %19 = vector.broadcast %cst_16 : f32 to vector<16x128xf32>
      %20 = arith.maximumf %18, %19 : vector<16x128xf32>
      %c0_17 = arith.constant 0 : index
      %c0_18 = arith.constant 0 : index
      %21 = vector.load %arg7[%c0_17, %c0_18] : memref<16x128xf32, #tpu.memory_space<vmem>>, vector<16x128xf32>
      tpu.vector_store %arg7[%c0_17, %c0_18], %20 {strides = array<i32>} : memref<16x128xf32, #tpu.memory_space<vmem>>, vector<16x128xf32>,
    } else {
    }
    return
  }
  func.func @transform_0(%arg0: i32, %arg1: i32, %arg2: i32) -> (i32, i32) {
    %c0_i32 = arith.constant 0 : i32
    return %arg0, %arg2 : i32, i32
  }
  func.func @transform_1(%arg0: i32, %arg1: i32, %arg2: i32) -> (i32, i32) {
    %c0_i32 = arith.constant 0 : i32
    return %arg2, %arg1 : i32, i32
  }
  func.func @transform_2(%arg0: i32, %arg1: i32, %arg2: i32) -> (i32, i32) {
    %c0_i32 = arith.constant 0 : i32
    %c0_i32_0 = arith.constant 0 : i32
    return %c0_i32, %arg1 : i32, i32
  }
  func.func @transform_3(%arg0: i32, %arg1: i32, %arg2: i32) -> (i32, i32) {
    %c0_i32 = arith.constant 0 : i32
    return %arg0, %arg1 : i32, i32
  }
  func.func @transform_4(%arg0: i32, %arg1: i32, %arg2: i32) -> (i32, i32) {
    %c0_i32 = arith.constant 0 : i32
    return %arg0, %arg1 : i32, i32
  }
}

</mosaic_0001>

<bundles_post_ra>
// kernel: mlp_forward.1
= control target key start
LH: loop header
LB: loop body
LE: loop exit
PB: predicated region body
PF: predicated region fallthrough
CT: control target
= control target key end

     0   :  { %9 = vsyncpa [#allocation4], 0  ;;  %s373_s0 = inlined_call_operand.vmem [shape: bf16[16,128], index: 0, kind: input, shape index: {}, may-alias: {0,3}]   ;;  %s374_s1 = inlined_call_operand.hbm [shape: bf16[128,128], index: 1, kind: input, shape index: {}]   ;;  %s375_s2 = inlined_call_operand.vmem [shape: f32[1,128], index: 2, kind: input, shape index: {}]   ;;  %s376_s3 = inlined_call_operand.vmem [shape: bf16[16,128], index: 3, kind: input, shape index: {}, may-alias: {0,3}]   ;;  %s377_s4 = inlined_call_operand.hbm [shape: f32[16,128], index: 4, kind: output, shape index: {}]  }
   0x1   :  { %10 = vsyncpa [#allocation5], 0  ;;  %s307_s15 = smov [#allocation3]   ;;  %s259_s19 = scalar_lea.hbm %s374_s1, 1024 }
   0x2   :  { %s18_s16 = sshll.u32 %s307_s15, 4  ;;  %p260_p0 = scmp.ne.s32.totalorder %s374_s1, %s259_s19  ;;  %s19_s16 = int_to_ptr.vmem [resolvable:$true] %s18_s16 }
   0x3   :  { %p263_p1 = scmp.lt.u32.totalorder %s259_s19, %s374_s1 }
   0x5   :  { %p265_p2 = pnand %p263_p1, %p260_p0 }
   0x7   :  { %268 = shalt.err (!%p265_p2)
}
   0x8   :  { %s269_s24 = scalar_lea.vmem %s19_s16, 1024  ;;  %p274_p4 = scmp.lt.s32.totalorder %s19_s16, %s19_s16 }
   0x9   :  { %p270_p3 = scmp.ne.s32.totalorder %s19_s16, %s269_s24  ;;  %p275_p5 = scmp.lt.s32.totalorder %s269_s24, %s269_s24 }
   0xb   :  { %p276_p6 = por %p275_p5, %p274_p4 }
   0xd   :  { %p277_p7 = pnand %p276_p6, %p270_p3 }
   0xf   :  { %280 = shalt.err (!%p277_p7)
}
  0x10   :  { %s308_s25 = smov 64   ;;  %s309_s26 = smov 4  }
  0x11   :  { %24 = dma.hbm_to_vmem [thread:$0]  %s374_s1, 1024, %s19_s16, [#allocation4], %s308_s25, %s308_s25, %s309_s26  }
  0x12   :  { %303 = dma.done.wait [#allocation4], 1024  }
  0x13   :  { %304 = vsyncadd [#allocation4], 4294966272  ;;  %v310_v0 = vmov 0.0   ;;  %vm311_vm0 = vmmov 0   ;;  %v250_v1 = vld [vmem:[#allocation3] sm:$0xff]   ;;  %v251_v2 = vld [vmem:[#allocation3 + $0x8] sm:$0xff]  }
  0x14   :  { %222 = vmatprep.subr.bf16.mxu0 %v310_v0  ;;  %238 = vmatprep.mubr.msk.bf16.mxu0 %vm311_vm0, %v310_v0  ;;  %v252_v3 = vld [vmem:[#allocation3 + $0x10] sm:$0xff]   ;;  %v253_v4 = vld [vmem:[#allocation3 + $0x18] sm:$0xff]   ;;  %v254_v5 = vld [vmem:[#allocation3 + $0x20] sm:$0xff]  }
  0x15   :  { %223 = vmatpush3.bf16.msra.mxu0 %v250_v1  ;;  %v255_v6 = vld [vmem:[#allocation3 + $0x28] sm:$0xff]   ;;  %v256_v7 = vld [vmem:[#allocation3 + $0x30] sm:$0xff]   ;;  %v257_v8 = vld [vmem:[#allocation3 + $0x38] sm:$0xff]  }
  0x16   :  { %224 = vmatprep.subr.bf16.mxu0 %v310_v0  ;;  %v258_v9 = vld [vmem:[%s373_s0] sm:$0xff]   ;;  %s312_s0 = smov [#allocation6]  }
  0x17   :  { %v210_v10 = vld [vmem:[%s376_s3] sm:$0xff]   ;;  %s187_s8 = sshll.u32 %s312_s0, 4  ;;  %s188_s8 = int_to_ptr.vmem [resolvable:$true] %s187_s8 }
  0x18   :  { %v208_v11 = vld [vmem:[%s375_s2] ss:$0 sm:$0xff]  ;;  %v211_v12 = vunpack.c.l.bf16 %v210_v10  ;;  %v212_v16 = vunpack.c.h.bf16 %v210_v10  ;;  %s281_s3 = scalar_lea.vmem %s188_s8, 256  ;;  %p286_p9 = scmp.lt.s32.totalorder %s188_s8, %s188_s8 }
  0x19   :  { %225 = vmatpush3.bf16.msra.mxu0 %v251_v2  ;;  %p282_p8 = scmp.ne.s32.totalorder %s188_s8, %s281_s3  ;;  %p287_p10 = scmp.lt.s32.totalorder %s281_s3, %s281_s3 }
  0x1a   :  { %226 = vmatprep.subr.bf16.mxu0 %v310_v0 }
  0x1b   :  { %p288_p11 = por %p287_p10, %p286_p9 }
  0x1d   :  { %227 = vmatpush3.bf16.msra.mxu0 %v252_v3  ;;  %p289_p12 = pnand %p288_p11, %p282_p8 }
  0x1e   :  { %228 = vmatprep.subr.bf16.mxu0 %v310_v0 }
  0x21   :  { %229 = vmatpush3.bf16.msra.mxu0 %v253_v4 }
  0x22   :  { %230 = vmatprep.subr.bf16.mxu0 %v310_v0 }
  0x25   :  { %231 = vmatpush3.bf16.msra.mxu0 %v254_v5 }
  0x26   :  { %232 = vmatprep.subr.bf16.mxu0 %v310_v0 }
  0x29   :  { %233 = vmatpush3.bf16.msra.mxu0 %v255_v6 }
  0x2a   :  { %234 = vmatprep.subr.bf16.mxu0 %v310_v0 }
  0x2d   :  { %235 = vmatpush3.bf16.msra.mxu0 %v256_v7 }
  0x2e   :  { %236 = vmatprep.subr.bf16.mxu0 %v310_v0 }
  0x31   :  { %237 = vmatpush3.bf16.msra.mxu0 %v257_v8 }
  0x34   :  { %239 = vmatmul.mubr.bf16.vlgmr.msra.gmra.mrb[0].mxu0 %v258_v9 }
 0x107   :  { %v147_v13 = vpop.f32.mrb[0].mxu0 }
 0x108   :  { %v170_v14 = vadd.f32 %v208_v11, %v147_v13  ;;  %v240_v15 = vpop.f32.mrb[1].mxu0 }
 0x109   :  { %v150_v17 = vpop.f32.mrb[2].mxu0 }
 0x10a   :  { %v176_v18 = vadd.f32 %v211_v12, %v170_v14  ;;  %v171_v19 = vadd.f32 %v208_v11, %v150_v17  ;;  %v241_v20 = vpop.f32.mrb[3].mxu0 }
 0x10c   :  { %v178_v21 = vmax.f32 %v176_v18, 0.0  ;;  %v177_v22 = vadd.f32 %v212_v16, %v171_v19 }
 0x10e   :  { %180 = vst [vmem:[#allocation6] sm:$0xff] %v178_v21  ;;  %v179_v23 = vmax.f32 %v177_v22, 0.0 }
 0x110   :  { %181 = vst [vmem:[#allocation6 + $0x8] sm:$0xff] %v179_v23 }
 0x111   :  { %292 = shalt.err (!%p289_p12)
}
 0x112   :  { %s293_s10 = scalar_lea.hbm %s377_s4, 256 }
 0x113   :  { %p294_p13 = scmp.ne.s32.totalorder %s377_s4, %s293_s10  ;;  %p297_p0 = scmp.lt.u32.totalorder %s293_s10, %s377_s4 }
 0x115   :  { %p299_p1 = pnand %p297_p0, %p294_p13 }
 0x117   :  { %302 = shalt.err (!%p299_p1)
}
 0x118   :  { %s313_s15 = smov 128   ;;  %s314_s16 = smov 8  }
 0x119   :  { %193 = dma.vmem_to_hbm [thread:$0]  %s188_s8, 256, %s377_s4, [#allocation5], %s313_s15, %s313_s15, %s314_s16  }
 0x11a   :  { %305 = dma.done.wait [#allocation5], 256  }
 0x11b   :  { %306 = vsyncadd [#allocation5], 4294967040 }
 0x11c   :  { %197 = vsyncpa [#allocation4], 1 }
 0x11d   :  { %198 = vsyncpa [#allocation5], 1 }

</bundles_post_ra>
